<compile_context>
chip_gen: v7x
topology: tpu7x:2x2x1
jax: 0.10.0
libtpu: 0.0.40
codegen_flags: <defaults>
</compile_context>

<pallas_src>
import jax
import jax.numpy as jnp
from jax.experimental import pallas as pl
from jax.experimental.pallas import tpu as pltpu


def linear_sub_relu_kernel(x_ref, w_ref, bias_ref, o_ref):
    # Lane-dense layout: batch lives on the 128-lane axis.
    #   x_ref    : (3, tm)  -- in-features on sublanes, batch on lanes
    #   w_ref    : (8, 3)   -- out-features on sublanes, in-features minor
    #   bias_ref : (8, 1)   -- fused bias (b - x2), one scalar per out feature
    #   o_ref    : (8, tm)  -- out-features on sublanes, batch on lanes
    x = x_ref[...]
    w = w_ref[...]
    # K=3 contraction unrolled as three broadcasted VPU FMAs (no MXU):
    # (8,1) weight-column lane-broadcast  x  (1,tm) input-row sublane-broadcast.
    acc = bias_ref[...] + w[:, 0:1] * x[0:1, :]
    acc = acc + w[:, 1:2] * x[1:2, :]
    acc = acc + w[:, 2:3] * x[2:3, :]
    o_ref[...] = jnp.maximum(acc, 0.0).astype(o_ref.dtype)


def model_forward(x1, x2, w_t, b, tm=8192, min_pallas_batch=512):
    """x1: (B, 3) f32, x2: (1,) f32, w_t: (3, 8) f32, b: (8,) f32 -> (B, 8) f32.

    Computes relu(x1 @ w_t + b - x2) == relu(Linear(3, 8)(x1) - x2).
    """
    B, in_f = x1.shape
    out_f = w_t.shape[1]
    # Fold the scalar subtraction into the bias once, outside the kernel.
    fused_bias = (b - x2.reshape(())).astype(jnp.float32)          # (8,)

    if B < min_pallas_batch:
        # Tiny batch (including the literal B=1 module): pallas_call launch +
        # DMA setup would be 10-100x the actual work; let XLA fuse it.
        return jnp.maximum(x1 @ w_t + fused_bias[None, :], 0.0)

    assert tm % 128 == 0, "tm must be a multiple of 128 (lane width)"

    x_t = x1.T                                # (3, B)  batch -> lanes
    w = w_t.T                                 # (8, 3)
    bias_col = fused_bias.reshape(out_f, 1)   # (8, 1)

    # Grid over the lane (batch) axis.  No padding / output slice: Pallas
    # masks reads/writes of the partial final block automatically, and each
    # output column depends only on its own input column, so stale values in
    # the padded lanes never reach valid output.
    out_t = pl.pallas_call(
        linear_sub_relu_kernel,
        out_shape=jax.ShapeDtypeStruct((out_f, B), jnp.float32),
        grid=(pl.cdiv(B, tm),),
        in_specs=[
            pl.BlockSpec((in_f, tm), lambda i: (0, i)),      # x_t tile (lane-dense)
            pl.BlockSpec((out_f, in_f), lambda i: (0, 0)),   # full W, VMEM-resident
            pl.BlockSpec((out_f, 1), lambda i: (0, 0)),      # fused bias
        ],
        out_specs=pl.BlockSpec((out_f, tm), lambda i: (0, i)),
        compiler_params=pltpu.CompilerParams(
            dimension_semantics=("parallel",)),
    )(x_t, w, bias_col)
    return out_t.T                            # back to (B, 8) for callers


if __name__ == "__main__":
    key = jax.random.PRNGKey(0)
    k_x1, k_x2, k_w, k_b, k_xb = jax.random.split(key, 5)

    # Inputs matching the PyTorch module: x1 = randn(1, 3), x2 = randn(1).
    x1 = jax.random.normal(k_x1, (1, 3), dtype=jnp.float32)
    x2 = jax.random.normal(k_x2, (1,), dtype=jnp.float32)

    # Deterministic Linear(3, 8) params, stored transposed (3, 8) for x @ W.
    bound = 1.0 / jnp.sqrt(3.0)
    w_t = jax.random.uniform(k_w, (3, 8), minval=-bound, maxval=bound,
                             dtype=jnp.float32)
    b = jax.random.uniform(k_b, (8,), minval=-bound, maxval=bound,
                           dtype=jnp.float32)

    def ref_fn(x):
        return jnp.maximum(x @ w_t + b[None, :] - x2.reshape(1, 1), 0.0)

    # --- literal module shape (B=1): tiny-batch (fused XLA) path ---
    out1 = jax.block_until_ready(model_forward(x1, x2, w_t, b))
    assert jnp.allclose(out1, ref_fn(x1), atol=1e-5, rtol=1e-5)

    # --- Pallas lane-dense path: multi-block grid + partial final block ---
    xb = jax.random.normal(k_xb, (3000, 3), dtype=jnp.float32)
    outb = jax.block_until_ready(model_forward(xb, x2, w_t, b, tm=1024))
    assert jnp.allclose(outb, ref_fn(xb), atol=1e-5, rtol=1e-5)

    # --- Pallas path with the default (large) tile: single partial block ---
    outc = jax.block_until_ready(model_forward(xb, x2, w_t, b))
    assert jnp.allclose(outc, ref_fn(xb), atol=1e-5, rtol=1e-5)

    print("KERNEL_OK")
</pallas_src>

<mosaic_0001>
module attributes {stable_mosaic.version = 11 : i64} {
  func.func @linear_sub_relu_kernel(%arg0: i32, %arg1: memref<3x1024xf32, #tpu.memory_space<vmem>>, %arg2: memref<8x3xf32, #tpu.memory_space<vmem>>, %arg3: memref<8x1xf32, #tpu.memory_space<vmem>>, %arg4: memref<8x1024xf32, #tpu.memory_space<vmem>>) attributes {dimension_semantics = [#tpu.dimension_semantics<parallel>], iteration_bounds = array<i64: 3>, scalar_prefetch = 0 : i64, scratch_operands = 0 : i64, tpu.core_type = #tpu.core_type<tc>, window_params = [{transform_indices = @transform_0, window_bounds = array<i64: 3, 1024>}, {pipeline_mode = #tpu.pipeline_mode<synchronous>, transform_indices = @transform_1, window_bounds = array<i64: 8, 3>}, {pipeline_mode = #tpu.pipeline_mode<synchronous>, transform_indices = @transform_2, window_bounds = array<i64: 8, 1>}, {transform_indices = @transform_3, window_bounds = array<i64: 8, 1024>}]} {
    %c0 = arith.constant 0 : index
    %c0_0 = arith.constant 0 : index
    %0 = vector.load %arg1[%c0, %c0_0] : memref<3x1024xf32, #tpu.memory_space<vmem>>, vector<3x1024xf32>
    %c0_1 = arith.constant 0 : index
    %c0_2 = arith.constant 0 : index
    %1 = vector.load %arg2[%c0_1, %c0_2] : memref<8x3xf32, #tpu.memory_space<vmem>>, vector<8x3xf32>
    %c0_3 = arith.constant 0 : index
    %c0_4 = arith.constant 0 : index
    %2 = vector.load %arg3[%c0_3, %c0_4] : memref<8x1xf32, #tpu.memory_space<vmem>>, vector<8x1xf32>
    %3 = vector.extract_strided_slice %1 {offsets = [0, 0], sizes = [8, 1], strides = [1, 1]} : vector<8x3xf32> to vector<8x1xf32>
    %4 = vector.extract_strided_slice %0 {offsets = [0, 0], sizes = [1, 1024], strides = [1, 1]} : vector<3x1024xf32> to vector<1x1024xf32>
    %5 = vector.broadcast %3 : vector<8x1xf32> to vector<8x1024xf32>
    %6 = vector.broadcast %4 : vector<1x1024xf32> to vector<8x1024xf32>
    %7 = arith.mulf %5, %6 : vector<8x1024xf32>
    %8 = vector.broadcast %2 : vector<8x1xf32> to vector<8x1024xf32>
    %9 = arith.addf %8, %7 : vector<8x1024xf32>
    %10 = vector.extract_strided_slice %1 {offsets = [0, 1], sizes = [8, 1], strides = [1, 1]} : vector<8x3xf32> to vector<8x1xf32>
    %11 = vector.extract_strided_slice %0 {offsets = [1, 0], sizes = [1, 1024], strides = [1, 1]} : vector<3x1024xf32> to vector<1x1024xf32>
    %12 = vector.broadcast %10 : vector<8x1xf32> to vector<8x1024xf32>
    %13 = vector.broadcast %11 : vector<1x1024xf32> to vector<8x1024xf32>
    %14 = arith.mulf %12, %13 : vector<8x1024xf32>
    %15 = arith.addf %9, %14 : vector<8x1024xf32>
    %16 = vector.extract_strided_slice %1 {offsets = [0, 2], sizes = [8, 1], strides = [1, 1]} : vector<8x3xf32> to vector<8x1xf32>
    %17 = vector.extract_strided_slice %0 {offsets = [2, 0], sizes = [1, 1024], strides = [1, 1]} : vector<3x1024xf32> to vector<1x1024xf32>
    %18 = vector.broadcast %16 : vector<8x1xf32> to vector<8x1024xf32>
    %19 = vector.broadcast %17 : vector<1x1024xf32> to vector<8x1024xf32>
    %20 = arith.mulf %18, %19 : vector<8x1024xf32>
    %21 = arith.addf %15, %20 : vector<8x1024xf32>
    %cst = arith.constant 0.000000e+00 : f32
    %22 = vector.broadcast %cst : f32 to vector<8x1024xf32>
    %23 = arith.maximumf %21, %22 : vector<8x1024xf32>
    %c0_5 = arith.constant 0 : index
    %c0_6 = arith.constant 0 : index
    %24 = vector.load %arg4[%c0_5, %c0_6] : memref<8x1024xf32, #tpu.memory_space<vmem>>, vector<8x1024xf32>
    tpu.vector_store %arg4[%c0_5, %c0_6], %23 {strides = array<i32>} : memref<8x1024xf32, #tpu.memory_space<vmem>>, vector<8x1024xf32>,
    return
  }
  func.func @transform_0(%arg0: i32) -> (i32, i32) {
    %c0_i32 = arith.constant 0 : i32
    %c0_i32_0 = arith.constant 0 : i32
    return %c0_i32, %arg0 : i32, i32
  }
  func.func @transform_1(%arg0: i32) -> (i32, i32) {
    %c0_i32 = arith.constant 0 : i32
    %c0_i32_0 = arith.constant 0 : i32
    %c0_i32_1 = arith.constant 0 : i32
    return %c0_i32, %c0_i32_0 : i32, i32
  }
  func.func @transform_2(%arg0: i32) -> (i32, i32) {
    %c0_i32 = arith.constant 0 : i32
    %c0_i32_0 = arith.constant 0 : i32
    %c0_i32_1 = arith.constant 0 : i32
    return %c0_i32, %c0_i32_0 : i32, i32
  }
  func.func @transform_3(%arg0: i32) -> (i32, i32) {
    %c0_i32 = arith.constant 0 : i32
    %c0_i32_0 = arith.constant 0 : i32
    return %c0_i32, %arg0 : i32, i32
  }
}

</mosaic_0001>

<bundles_post_ra>
// kernel: tpu_custom_call.1
= control target key start
LH: loop header
LB: loop body
LE: loop exit
PB: predicated region body
PF: predicated region fallthrough
CT: control target
= control target key end

     0   :  { %8 = vsyncpa [#allocation3], 0  ;;  %s940_s0 = inlined_call_operand.hbm [shape: f32[3,3000], index: 0, kind: input, shape index: {}]   ;;  %s941_s1 = inlined_call_operand.vmem [shape: f32[8,3], index: 1, kind: input, shape index: {}]   ;;  %s942_s2 = inlined_call_operand.vmem [shape: f32[8,1], index: 2, kind: input, shape index: {}]   ;;  %s943_s3 = inlined_call_operand.hbm [shape: f32[8,3000], index: 3, kind: output, shape index: {}]  }
   0x1   :  { %10 = vsyncpa [#allocation3 + $0x1], 0 }
   0x2   :  { %11 = vsyncpa [#allocation4], 0 }
   0x3   :  { %13 = vsyncpa [#allocation4 + $0x1], 0  ;;  %s774_s12 = smov 0   ;;  %s776_s13 = smov 0  }
   0x4   :  { %s778_s14 = smov 0   ;;  %s780_s15 = smov 0  }
   0x5 LB: > { %s795_s16 = sadd.s32 4294967295, %s747_s15   ;;  %s582_s17 = sadd.s32 4294967294, %s747_s15   ;;  %s747_s15 = sphi %s780_s15, %s957_s15   ;;  %s743_s14 = sphi %s778_s14, %s956_s14   ;;  %s739_s13 = sphi %s776_s13, %s955_s13   ;;  %s735_s12 = sphi %s774_s12, %s954_s12  }
   0x6   : > { %s799_s18 = sadd.s32 1, %s747_s15   ;;  %s26_s19 = sadd.s32 1, %s743_s14 }
   0x7   : > { %s23_s20 = ssub.s32 %s747_s15, %s799_s18  ;;  %p33_p0 = scmp.ne.s32.totalorder %s743_s14, %s739_s13 }
   0x8   : > { %p24_p1 = scmp.eq.s32.totalorder %s23_s20, 0  ;;  %p34_p2 = scmp.eq.s32.totalorder %s747_s15, 0 }
   0x9   : > { %p39_p3 = scmp.ne.s32.totalorder %s739_s13, %s735_s12  ;;  %p40_p4 = scmp.eq.s32.totalorder %s795_s16, 0 }
   0xa   : > { %s811_s21 = scalar_select %p24_p1, %s743_s14, %s26_s19  }
   0xb   : > { %p813_p5 = por %p34_p2, %p33_p0  ;;  %p817_p6 = por %p40_p4, %p39_p3 }
   0xc   : > { %p105_p7 = scmp.eq.s32.totalorder %s795_s16, 2  ;;  %p111_p8 = scmp.eq.s32.totalorder %s582_s17, 2 }
   0xd   : > { %p610_p9 = scmp.lt.s32.totalorder %s747_s15, 3  ;;  %s137_s26 = sand.u32 1, %s743_s14  }
   0xe   : > { %p823_p10 = por %p105_p7, %p33_p0  ;;  %p827_p11 = por %p111_p8, %p39_p3 }
   0xf   : > { %s596_s27 = sshll.u32 %s747_s15, 9  ;;  %s585_s28 = sshll.u32 %s137_s26, 5 }
  0x10   : > { %s947_s24 = scalar_select %p823_p10, 1, 0 }
  0x11   : > { %s948_s25 = scalar_select %p827_p11, 1, 0 }
  0x12   : > { %s836_s4 = scalar_lea.hbm %s940_s0, %s596_s27  ;;  %s141_s5 = scalar_lea.vmem [#allocation2], %s585_s28 }
  0x13   : > { %s149_s6 = sshll.u32 %s141_s5, 4  ;;  %p840_p12 = pnand %p610_p9, %p813_p5  ;;  %s844_s6 = int_to_ptr.vmem [resolvable:$true] %s149_s6 }
  0x14   : > { %s138_s8 = scalar_lea.sflag [#allocation3], %s137_s26  ;;  %s651_s9 = scalar_lea.hbm %s836_s4, 512 }
  0x15   : > { %p652_p1 = scmp.ne.s32.totalorder %s836_s4, %s651_s9  ;;  %p653_p2 = pneg %p840_p12 }
  0x16   : > { %s656_s17 = scalar_lea.hbm %s940_s0, 1536  ;;  %p657_p5 = scmp.lt.u32.totalorder %s836_s4, %s940_s0 }
  0x17   : > { %p654_p3 = pnand %p653_p2, %p652_p1  ;;  %p658_p7 = scmp.lt.u32.totalorder %s656_s17, %s651_s9 }
  0x18   : > { %p660_p9 = scmp.lt.u32.totalorder %s651_s9, %s836_s4 }
  0x19   : > { %p655_p4 = pneg %p654_p3  ;;  %p659_p8 = por %p658_p7, %p657_p5 }
  0x1b   : > { %p661_p13 = por %p660_p9, %p659_p8 }
  0x1d   : > { %p662_p0 = pnand %p661_p13, %p655_p4 }
  0x1f   : > { %665 = shalt.err (!%p662_p0)
}
  0x20   : > { %s666_s22 = scalar_lea.vmem %s844_s6, 512  ;;  %s749_s26 = smov [#allocation2]  }
  0x21   : > { %p667_p1 = scmp.ne.s32.totalorder %s844_s6, %s666_s22  ;;  %s671_s27 = sshll.u32 %s749_s26, 4  ;;  %s672_s27 = int_to_ptr.vmem [resolvable:$false] %s671_s27 }
  0x22   : > { %s673_s28 = scalar_lea.vmem %s672_s27, 1024  ;;  %p674_p10 = scmp.lt.s32.totalorder %s844_s6, %s672_s27 }
  0x23   : > { %p669_p3 = pnand %p667_p1, %p653_p2  ;;  %p675_p5 = scmp.lt.s32.totalorder %s673_s28, %s666_s22 }
  0x25   : > { %p670_p11 = pneg %p669_p3  ;;  %p676_p7 = por %p675_p5, %p674_p10 }
  0x27   : > { %p677_p8 = pnand %p676_p7, %p670_p11 }
  0x29   : > { %680 = shalt.err (!%p677_p8)
}
  0x2a   : > { %605 = dma.hbm_to_vmem [thread:$0]  (!%p840_p12), %s836_s4, 512, %s844_s6, %s138_s8  }
  0x2b   : > { %p950_p13 = scmp.lt.s32.totalorder %s747_s15, 4  ;;  %p951_p0 = scmp.ge.s32.totalorder %s747_s15, 1 }
  0x2d   : > { %p155_p2 = pnand %p951_p0, %p950_p13 }
  0x2e   : > { %s878_s29 = sand.u32 (!%p155_p2), 1, %s739_s13  }
  0x2f   : > { %158 = sbr.rel (%p155_p2) target bundleno = 216 (0xd8), region = 32  ;;  %s589_s30 = sshll.u32 (!%p155_p2), %s878_s29, 5 }
  0x30   : > { %s161_s5 = scalar_lea.sflag (!%p155_p2), [#allocation3], %s878_s29  ;;  %s164_s9 = scalar_lea.vmem (!%p155_p2), [#allocation2], %s589_s30 }
  0x36   : > { %726 = dma.done.wait (%p817_p6), %s161_s5, 512  }
  0x37   : > { %728 = vsyncadd (%p817_p6), %s161_s5, 4294966784  ;;  %v750_v0 = vmov 0   ;;  %v751_v1 = vmov 1   ;;  %v193_v2 = vld [vmem:[%s941_s1] sm:$0xff]  ;;  %v752_v4 = vmov 2   ;;  %v204_v5 = vlaneseq  ;;  %s590_s23 = sshll.u32 %s878_s29, 6 }
  0x38   : > { %647 = vset.pattern.permute.xlu0 %v750_v0  ;;  %648 = vset.pattern.permute.xlu1 %v751_v1  ;;  %v194_v3 = vld [vmem:[%s942_s2] sm:$0xff]  ;;  %v190_v10 = vld [vmem:[%s164_s9 + $0x8] sm:$0x77]  ;;  %v191_v11 = vld [vmem:[%s164_s9 + $0x10] sm:$0x77]  ;;  %s597_s10 = sshll.u32 %s795_s16, 10 }
  0x39   : > { %197 = vperm.xlu0 %647, %v193_v2   ;;  %298 = vperm.xlu1 %648, %v193_v2   ;;  %v205_v6 = vshrl.u32 %v204_v5, 7  ;;  %v189_v9 = vld [vmem:[%s164_s9] sm:$0x77]  ;;  %v192_v12 = vld [vmem:[%s164_s9 + $0x18] sm:$0x77]  ;;  %s186_s11 = scalar_lea.vmem [#allocation5], %s590_s23  ;;  %s897_s16 = scalar_lea.hbm %s943_s3, %s597_s10 }
  0x3a   : > { %s512_s17 = sshll.u32 %s186_s11, 4  ;;  %s498_s22 = scalar_lea.sflag [#allocation4], %s878_s29  ;;  %s899_s17 = int_to_ptr.vmem [resolvable:$true] %s512_s17 }
  0x3b   : > { %v206_v7 = vsub.s32 0, %v205_v6  ;;  %v210_v8 = vsub.s32 4, %v205_v6  ;;  %v303_v13 = vsub.s32 1, %v205_v6  ;;  %v307_v21 = vsub.s32 5, %v205_v6  ;;  %s681_s26 = scalar_lea.vmem %s899_s17, 1024  ;;  %p952_p10 = scmp.ne.s32.totalorder %s947_s24, 0 }
  0x3c   : > { %v395_v23 = vsub.s32 2, %v205_v6  ;;  %v399_v28 = vsub.s32 6, %v205_v6  ;;  %p682_p6 = scmp.ne.s32.totalorder %s899_s17, %s681_s26  ;;  %s753_s27 = smov [#allocation5]  }
  0x3d   : > { %286 = vperm.xlu0 %647, %v194_v3   ;;  %649 = vset.pattern.permute.xlu1 %v752_v4  ;;  %v207_v14 = vrot.slane %v189_v9, %v206_v7  ;;  %v211_v15 = vrot.slane %v189_v9, %v210_v8  ;;  %v215_v16 = vrot.slane %v190_v10, %v206_v7  ;;  %s685_s28 = sshll.u32 %s753_s27, 4  ;;  %s686_s28 = int_to_ptr.vmem [resolvable:$false] %s685_s28 }
  0x3e   : > { %390 = vperm.xlu1 %649, %v193_v2   ;;  %v219_v17 = vrot.slane %v190_v10, %v210_v8  ;;  %v223_v18 = vrot.slane %v191_v11, %v206_v7  ;;  %v227_v19 = vrot.slane %v191_v11, %v210_v8  ;;  %v231_v20 = vrot.slane %v192_v12, %v206_v7  ;;  %p683_p11 = pnand %p682_p6, %p952_p10  ;;  %s687_s30 = scalar_lea.vmem %s686_s28, 2048 }
  0x3f   : > { %v235_v22 = vrot.slane %v192_v12, %v210_v8  ;;  %v304_v24 = vrot.slane %v189_v9, %v303_v13  ;;  %v247_v25 = vrot.slane %v207_v14, %v206_v7  ;;  %v251_v26 = vrot.slane %v211_v15, %v206_v7  ;;  %p688_p4 = scmp.lt.s32.totalorder %s899_s17, %s686_s28  ;;  %p689_p9 = scmp.lt.s32.totalorder %s687_s30, %s681_s26 }
  0x40   : > { %v255_v27 = vrot.slane %v215_v16, %v206_v7  ;;  %v259_v29 = vrot.slane %v219_v17, %v206_v7  ;;  %v263_v30 = vrot.slane %v223_v18, %v206_v7  ;;  %v267_v31 = vrot.slane %v227_v19, %v206_v7  ;;  %p684_p12 = pneg %p683_p11 }
  0x41   : > { %650 = vset.pattern.permute.xlu0 %v752_v4  ;;  %v271_v32 = vrot.slane %v231_v20, %v206_v7  ;;  %v275_v33 = vrot.slane %v235_v22, %v206_v7  ;;  %v308_v34 = vrot.slane %v189_v9, %v307_v21  ;;  %v312_v35 = vrot.slane %v190_v10, %v303_v13  ;;  %p690_p1 = por %p689_p9, %p688_p4 }
  0x42   : > { %v316_v36 = vrot.slane %v190_v10, %v307_v21  ;;  %v320_v37 = vrot.slane %v191_v11, %v303_v13  ;;  %v324_v38 = vrot.slane %v191_v11, %v307_v21  ;;  %v328_v39 = vrot.slane %v192_v12, %v303_v13 }
  0x43   : > { %v332_v40 = vrot.slane %v192_v12, %v307_v21  ;;  %v396_v41 = vrot.slane %v189_v9, %v395_v23  ;;  %v400_v42 = vrot.slane %v189_v9, %v399_v28  ;;  %v404_v43 = vrot.slane %v190_v10, %v395_v23  ;;  %p691_p3 = pnand %p690_p1, %p684_p12 }
  0x44   : > { %v408_v44 = vrot.slane %v190_v10, %v399_v28  ;;  %v412_v45 = vrot.slane %v191_v11, %v395_v23  ;;  %v416_v46 = vrot.slane %v191_v11, %v399_v28  ;;  %v420_v47 = vrot.slane %v192_v12, %v395_v23 }
  0x45   : > { %v424_v48 = vrot.slane %v192_v12, %v399_v28  ;;  %v344_v49 = vrot.slane %v304_v24, %v303_v13  ;;  %v348_v50 = vrot.slane %v308_v34, %v303_v13  ;;  %v352_v51 = vrot.slane %v312_v35, %v303_v13 }
  0x46   : > { %v356_v52 = vrot.slane %v316_v36, %v303_v13  ;;  %v360_v53 = vrot.slane %v320_v37, %v303_v13  ;;  %v364_v54 = vrot.slane %v324_v38, %v303_v13  ;;  %v368_v55 = vrot.slane %v328_v39, %v303_v13 }
  0x47   : > { %v372_v56 = vrot.slane %v332_v40, %v303_v13  ;;  %v436_v57 = vrot.slane %v396_v41, %v395_v23  ;;  %v440_v58 = vrot.slane %v400_v42, %v395_v23  ;;  %v444_v59 = vrot.slane %v404_v43, %v395_v23 }
  0x48   : > { %v448_v60 = vrot.slane %v408_v44, %v395_v23  ;;  %v452_v63 = vrot.slane %v412_v45, %v395_v23  ;;  %v456_v0 = vrot.slane %v416_v46, %v395_v23  ;;  %v460_v1 = vrot.slane %v420_v47, %v395_v23 }
  0x49   : > { %v464_v2 = vrot.slane %v424_v48, %v395_v23 }
  0xb8   : > { %v198_v61 = vpop.permute.xlu0 %197  ;;  %v299_v62 = vpop.permute.xlu1 %298 }
  0xb9   : > { %v276_v3 = vmul.f32 %v247_v25, %v198_v61  ;;  %v277_v4 = vmul.f32 %v251_v26, %v198_v61  ;;  %v278_v5 = vmul.f32 %v255_v27, %v198_v61  ;;  %v279_v6 = vmul.f32 %v259_v29, %v198_v61 }
  0xba   : > { %v280_v7 = vmul.f32 %v263_v30, %v198_v61  ;;  %v281_v8 = vmul.f32 %v267_v31, %v198_v61  ;;  %v282_v9 = vmul.f32 %v271_v32, %v198_v61  ;;  %v283_v10 = vmul.f32 %v275_v33, %v198_v61 }
  0xbb   : > { %v373_v11 = vmul.f32 %v344_v49, %v299_v62  ;;  %v374_v12 = vmul.f32 %v348_v50, %v299_v62  ;;  %v375_v13 = vmul.f32 %v352_v51, %v299_v62  ;;  %v376_v14 = vmul.f32 %v356_v52, %v299_v62 }
  0xbc   : > { %v287_v15 = vpop.permute.xlu0 %286  ;;  %v377_v16 = vmul.f32 %v360_v53, %v299_v62  ;;  %v378_v17 = vmul.f32 %v364_v54, %v299_v62  ;;  %v379_v18 = vmul.f32 %v368_v55, %v299_v62  ;;  %v380_v19 = vmul.f32 %v372_v56, %v299_v62 }
  0xbd   : > { %v289_v20 = vadd.f32 %v287_v15, %v276_v3  ;;  %v290_v21 = vadd.f32 %v287_v15, %v277_v4  ;;  %v291_v22 = vadd.f32 %v287_v15, %v278_v5  ;;  %v292_v23 = vadd.f32 %v287_v15, %v279_v6  ;;  %v391_v28 = vpop.permute.xlu1 %390 }
  0xbe   : > { %v293_v24 = vadd.f32 %v287_v15, %v280_v7  ;;  %v294_v25 = vadd.f32 %v287_v15, %v281_v8  ;;  %v295_v26 = vadd.f32 %v287_v15, %v282_v9  ;;  %v296_v27 = vadd.f32 %v287_v15, %v283_v10 }
  0xbf   : > { %v381_v29 = vadd.f32 %v373_v11, %v289_v20  ;;  %v382_v30 = vadd.f32 %v374_v12, %v290_v21  ;;  %v383_v31 = vadd.f32 %v375_v13, %v291_v22  ;;  %v384_v32 = vadd.f32 %v376_v14, %v292_v23 }
  0xc0   : > { %v385_v33 = vadd.f32 %v377_v16, %v293_v24  ;;  %v386_v34 = vadd.f32 %v378_v17, %v294_v25  ;;  %v387_v35 = vadd.f32 %v379_v18, %v295_v26  ;;  %v388_v36 = vadd.f32 %v380_v19, %v296_v27 }
  0xc1   : > { %v465_v37 = vmul.f32 %v436_v57, %v391_v28  ;;  %v466_v38 = vmul.f32 %v440_v58, %v391_v28  ;;  %v467_v39 = vmul.f32 %v444_v59, %v391_v28  ;;  %v468_v40 = vmul.f32 %v448_v60, %v391_v28 }
  0xc2   : > { %v469_v41 = vmul.f32 %v452_v63, %v391_v28  ;;  %v470_v42 = vmul.f32 %v456_v0, %v391_v28  ;;  %v471_v43 = vmul.f32 %v460_v1, %v391_v28  ;;  %v472_v44 = vmul.f32 %v464_v2, %v391_v28 }
  0xc3   : > { %v473_v45 = vadd.f32 %v465_v37, %v381_v29  ;;  %v474_v46 = vadd.f32 %v466_v38, %v382_v30  ;;  %v475_v47 = vadd.f32 %v467_v39, %v383_v31  ;;  %v476_v48 = vadd.f32 %v468_v40, %v384_v32 }
  0xc4   : > { %v477_v49 = vadd.f32 %v469_v41, %v385_v33  ;;  %v478_v50 = vadd.f32 %v470_v42, %v386_v34  ;;  %v479_v51 = vadd.f32 %v471_v43, %v387_v35  ;;  %v480_v52 = vadd.f32 %v472_v44, %v388_v36 }
  0xc5   : > { %v481_v53 = vmax.f32 %v473_v45, 0.0  ;;  %v482_v54 = vmax.f32 %v474_v46, 0.0  ;;  %v483_v55 = vmax.f32 %v475_v47, 0.0  ;;  %v484_v56 = vmax.f32 %v476_v48, 0.0 }
  0xc6   : > { %v485_v57 = vmax.f32 %v477_v49, 0.0  ;;  %v486_v58 = vmax.f32 %v478_v50, 0.0  ;;  %v487_v59 = vmax.f32 %v479_v51, 0.0  ;;  %v488_v60 = vmax.f32 %v480_v52, 0.0 }
  0xc7   : > { %489 = vst [vmem:[%s186_s11] sm:$0xff] %v481_v53  ;;  %490 = vst [vmem:[%s186_s11 + $0x8] sm:$0xff] %v482_v54 }
  0xc8   : > { %491 = vst [vmem:[%s186_s11 + $0x10] sm:$0xff] %v483_v55  ;;  %492 = vst [vmem:[%s186_s11 + $0x18] sm:$0xff] %v484_v56 }
  0xc9   : > { %493 = vst [vmem:[%s186_s11 + $0x20] sm:$0xff] %v485_v57  ;;  %494 = vst [vmem:[%s186_s11 + $0x28] sm:$0xff] %v486_v58 }
  0xca   : > { %495 = vst [vmem:[%s186_s11 + $0x30] sm:$0xff] %v487_v59  ;;  %496 = vst [vmem:[%s186_s11 + $0x38] sm:$0xff] %v488_v60 }
  0xcb   : > { %694 = shalt.err (!%p691_p3)
}
  0xcc   : > { %s695_s29 = scalar_lea.hbm %s897_s16, 1024  ;;  %s699_s4 = scalar_lea.hbm %s943_s3, 3072 }
  0xcd   : > { %p696_p5 = scmp.ne.s32.totalorder %s897_s16, %s695_s29  ;;  %p700_p13 = scmp.lt.u32.totalorder %s897_s16, %s943_s3 }
  0xce   : > { %p701_p0 = scmp.lt.u32.totalorder %s699_s4, %s695_s29  ;;  %p703_p6 = scmp.lt.u32.totalorder %s695_s29, %s897_s16 }
  0xcf   : > { %p697_p7 = pnand %p696_p5, %p952_p10 }
  0xd0   : > { %p702_p2 = por %p701_p0, %p700_p13 }
  0xd1   : > { %p698_p8 = pneg %p697_p7 }
  0xd2   : > { %p704_p11 = por %p703_p6, %p702_p2 }
  0xd4   : > { %p705_p12 = pnand %p704_p11, %p698_p8 }
  0xd6   : > { %708 = shalt.err (!%p705_p12)
}
  0xd7   : > { %600 = dma.vmem_to_hbm [thread:$0]  (%p952_p10), %s899_s17, 1024, %s897_s16, %s498_s22  }
  0xd8 PF: > { %p611_p4 = scmp.ge.s32.totalorder %s747_s15, 2  ;;  %s524_s8 = sand.u32 1, %s735_s12  }
  0xd9   : > { %p953_p9 = scmp.ne.s32.totalorder %s948_s25, 0  ;;  %s525_s23 = scalar_lea.sflag [#allocation4], %s524_s8 }
  0xdb   : > { %p607_p1 = pnand %p611_p4, %p953_p9 }
  0xdd   : > { %730 = dma.done.wait (!%p607_p1), %s525_s23, 1024  }
  0xde   : > { %732 = vsyncadd (!%p607_p1), %s525_s23, 4294966272  ;;  %p16_p3 = scmp.ge.s32.totalorder %s799_s18, 5   ;;  %s954_s12 = smov %s739_s13 }
  0xdf   : > { %s955_s13 = smov %s743_s14  ;;  %s956_s14 = smov %s811_s21 }
  0xe0   : > { %s957_s15 = smov %s799_s18  ;;  %18 = sbr.rel (!%p16_p3) target bundleno = 5 (0x5), region = 77 }
  0xe7   :  { %530 = vsyncpa [#allocation3], 1 }
  0xe8   :  { %532 = vsyncpa [#allocation3 + $0x1], 1 }
  0xe9   :  { %533 = vsyncpa [#allocation4], 1 }
  0xea   :  { %535 = vsyncpa [#allocation4 + $0x1], 1 }

</bundles_post_ra>
